<compile_context>
chip_gen: v5e
topology: v5e:2x2
jax: 0.10.0
libtpu: 0.0.40
codegen_flags: <defaults>
</compile_context>

<pallas_src>
import functools

import jax
import jax.numpy as jnp
import numpy as np
from jax.experimental import pallas as pl
from jax.experimental.pallas import tpu as pltpu


def _round_up(x, m):
    return (x + m - 1) // m * m


# Target per-block slab (f32, single buffer). Double-buffered in+out stays
# well under the default scoped VMEM limit on every generation (incl. v7x).
_VMEM_BLOCK_BYTES = 2 << 20


# ---------------------------------------------------------------------------
# Kernels
# ---------------------------------------------------------------------------
def _layernorm_kernel(*refs, eps, f_valid, f_padded, affine):
    # Block: x (ROW_TILE, Fp), a/b (1, Fp) if affine. Reduce over lanes.
    if affine:
        x_ref, a_ref, b_ref, o_ref = refs
    else:
        x_ref, o_ref = refs
        a_ref = b_ref = None

    x = x_ref[...].astype(jnp.float32)                       # (R, Fp)
    if f_valid == f_padded:
        mu = jnp.mean(x, axis=-1, keepdims=True)
        xc = x - mu
        # torch.var default is unbiased (divide by N-1).
        var = jnp.sum(xc * xc, axis=-1, keepdims=True) / (f_valid - 1)
    else:
        # Padded lanes are zero on input; exclude them from the statistics.
        lane = jax.lax.broadcasted_iota(jnp.int32, (1, f_padded), 1)
        mask = lane < f_valid
        mu = jnp.sum(x, axis=-1, keepdims=True) / f_valid     # pads are 0
        xc = x - mu
        xcm = jnp.where(mask, xc, 0.0)
        var = jnp.sum(xcm * xcm, axis=-1, keepdims=True) / (f_valid - 1)

    std = jnp.sqrt(var + 1e-5)
    # Reciprocal on the EUP instead of a VALU divide (memory-bound anyway).
    inv = pl.reciprocal(std + eps, approx=True)
    y = xc * inv
    if affine:
        a = a_ref[...].astype(jnp.float32)                   # (1, Fp)
        b = b_ref[...].astype(jnp.float32)
        y = a * y + b
    o_ref[...] = y.astype(o_ref.dtype)


def _instancenorm_kernel(*refs, use_mean, use_var, affine):
    # Block: x (1, T, F_TILE), a/b (1, 1, F_TILE) if affine. Reduce over T.
    if affine:
        x_ref, a_ref, b_ref, o_ref = refs
    else:
        x_ref, o_ref = refs
        a_ref = b_ref = None

    x = x_ref[...].astype(jnp.float32)                       # (1, T, F_TILE)
    y = x
    if use_mean or use_var:
        t = x.shape[1]
        mu = jnp.mean(x, axis=1, keepdims=True)
        if use_mean:
            y = y - mu
        if use_var:
            xc = x - mu
            var = jnp.sum(xc * xc, axis=1, keepdims=True) / (t - 1)  # unbiased
            std = jnp.sqrt(var + 1e-5)
            # Note: the PyTorch InstanceNorm.forward does NOT add eps here.
            inv = pl.reciprocal(std, approx=True)
            y = y * inv
    if affine:
        a = a_ref[...].astype(jnp.float32)                   # (1, 1, F_TILE)
        b = b_ref[...].astype(jnp.float32)
        y = a * y + b
    o_ref[...] = y.astype(o_ref.dtype)


# ---------------------------------------------------------------------------
# Wrappers
# ---------------------------------------------------------------------------
def _layernorm_pallas(x, a, b, *, affine, eps):
    B, T, F = x.shape
    N = B * T
    Fp = _round_up(F, 128)                                    # lane-dense

    x2 = x.reshape(N, F)
    if Fp != F:
        x2 = jnp.pad(x2, ((0, 0), (0, Fp - F)))

    # Rows per block: multiple of 8, capped by the VMEM budget and 512.
    row_cap = max(8, (_VMEM_BLOCK_BYTES // (4 * Fp)) // 8 * 8)
    row_tile = min(512, row_cap, _round_up(N, 8))
    Np = _round_up(N, row_tile)
    if Np != N:
        x2 = jnp.pad(x2, ((0, Np - N), (0, 0)))               # zero rows: safe

    kernel = functools.partial(_layernorm_kernel, eps=eps, f_valid=F,
                               f_padded=Fp, affine=affine)

    in_specs = [pl.BlockSpec((row_tile, Fp), lambda i: (i, 0))]
    args = [x2]
    if affine:
        a2 = a.reshape(1, F)
        b2 = b.reshape(1, F)
        if Fp != F:
            a2 = jnp.pad(a2, ((0, 0), (0, Fp - F)))
            b2 = jnp.pad(b2, ((0, 0), (0, Fp - F)))
        in_specs += [pl.BlockSpec((1, Fp), lambda i: (0, 0)),
                     pl.BlockSpec((1, Fp), lambda i: (0, 0))]
        args += [a2, b2]

    out = pl.pallas_call(
        kernel,
        out_shape=jax.ShapeDtypeStruct((Np, Fp), x.dtype),
        grid=(Np // row_tile,),
        in_specs=in_specs,
        out_specs=pl.BlockSpec((row_tile, Fp), lambda i: (i, 0)),
        compiler_params=pltpu.CompilerParams(
            dimension_semantics=("parallel",)),
    )(*args)
    return out[:N, :F].reshape(B, T, F)


def _instancenorm_pallas(x, a, b, *, affine, use_mean, use_var):
    B, T, F = x.shape
    Fp = _round_up(F, 128)

    # Lane tile: multiple of 128, capped by the VMEM budget and 512.  The
    # reduction axis (T) stays fully inside the block (single-pass stats).
    # TODO(synk): for extremely long T a full-T block may exceed VMEM; that
    # case needs a two-pass (accumulator) variant.
    f_cap = max(128, (_VMEM_BLOCK_BYTES // (4 * T)) // 128 * 128)
    f_tile = min(512, f_cap, Fp)
    Fp = _round_up(Fp, f_tile)

    xp = x
    if Fp != F:
        xp = jnp.pad(x, ((0, 0), (0, 0), (0, Fp - F)))

    kernel = functools.partial(_instancenorm_kernel, use_mean=use_mean,
                               use_var=use_var, affine=affine)

    in_specs = [pl.BlockSpec((1, T, f_tile), lambda i, j: (i, 0, j))]
    args = [xp]
    if affine:
        ap = a.reshape(1, 1, F)
        bp = b.reshape(1, 1, F)
        if Fp != F:
            ap = jnp.pad(ap, ((0, 0), (0, 0), (0, Fp - F)))
            bp = jnp.pad(bp, ((0, 0), (0, 0), (0, Fp - F)))
        in_specs += [pl.BlockSpec((1, 1, f_tile), lambda i, j: (0, 0, j)),
                     pl.BlockSpec((1, 1, f_tile), lambda i, j: (0, 0, j))]
        args += [ap, bp]

    out = pl.pallas_call(
        kernel,
        out_shape=jax.ShapeDtypeStruct((B, T, Fp), x.dtype),
        grid=(B, Fp // f_tile),
        in_specs=in_specs,
        out_specs=pl.BlockSpec((1, T, f_tile), lambda i, j: (i, 0, j)),
        compiler_params=pltpu.CompilerParams(
            dimension_semantics=("parallel", "parallel")),
    )(*args)
    return out[:, :, :F]


def normalization_layer(x, a=None, b=None, *, norm, affine=True, var=True,
                        mean=True, eps=1e-6):
    """Pallas implementation of NormalizationLayer.forward for 3-D (B, T, F)."""
    if norm == "LayerNorm":
        return _layernorm_pallas(x, a, b, affine=affine, eps=eps)
    if norm == "InstanceNorm":
        return _instancenorm_pallas(x, a, b, affine=affine, use_mean=mean,
                                    use_var=var)
    return x  # norm_ is None -> identity


# ---------------------------------------------------------------------------
# Pure-JAX reference (mirrors the PyTorch forward exactly)
# ---------------------------------------------------------------------------
def _ref(x, a, b, *, norm, affine=True, var=True, mean=True, eps=1e-6):
    xf = x.astype(jnp.float32)
    if norm == "LayerNorm":
        mu = jnp.mean(xf, axis=-1, keepdims=True)
        v = jnp.var(xf, axis=-1, keepdims=True, ddof=1)
        std = jnp.sqrt(v + 1e-5)
        y = (xf - mu) / (std + eps)
        if affine:
            y = a * y + b
        return y.astype(x.dtype)
    elif norm == "InstanceNorm":
        mu = jnp.mean(xf, axis=1, keepdims=True)
        v = jnp.var(xf, axis=1, keepdims=True, ddof=1)
        std = jnp.sqrt(v + 1e-5)
        y = xf
        if mean:
            y = y - mu
        if var:
            y = y / std
        if affine:
            y = a * y + b
        return y.astype(x.dtype)
    return x


# ---------------------------------------------------------------------------
if __name__ == "__main__":
    B, T, F = 2, 8, 32
    key = jax.random.PRNGKey(0)
    x = jax.random.normal(key, (B, T, F), dtype=jnp.float32)

    # Deterministic parameter init (matches nn.Parameter(torch.ones/zeros)).
    a_param = jnp.ones((1, 1, F), dtype=jnp.float32)
    b_param = jnp.zeros((1, 1, F), dtype=jnp.float32)

    configs = [
        dict(norm="LayerNorm", affine=True, var=True, mean=True),
        dict(norm="LayerNorm", affine=False, var=True, mean=True),
        dict(norm="InstanceNorm", affine=True, var=True, mean=True),
        dict(norm="InstanceNorm", affine=True, var=False, mean=True),
        dict(norm="InstanceNorm", affine=False, var=True, mean=False),
    ]

    ok = True
    for cfg in configs:
        out = normalization_layer(x, a_param, b_param, **cfg)
        out = jax.block_until_ready(out)
        ref = _ref(x, a_param, b_param, **cfg)
        # Tolerance accounts for the EUP approximate reciprocal (rel err ~1e-4).
        if not np.allclose(np.asarray(out), np.asarray(ref),
                           rtol=5e-3, atol=5e-3):
            ok = False
            err = np.max(np.abs(np.asarray(out) - np.asarray(ref)))
            print(f"MISMATCH for {cfg}: max err {err}")

    if ok:
        print("KERNEL_OK")
</pallas_src>

<mosaic_0001>
module attributes {stable_mosaic.version = 11 : i64} {
  func.func @_layernorm_kernel(%arg0: i32, %arg1: memref<16x128xf32, #tpu.memory_space<vmem>>, %arg2: memref<1x128xf32, #tpu.memory_space<vmem>>, %arg3: memref<1x128xf32, #tpu.memory_space<vmem>>, %arg4: memref<16x128xf32, #tpu.memory_space<vmem>>) attributes {dimension_semantics = [#tpu.dimension_semantics<parallel>], iteration_bounds = array<i64: 1>, scalar_prefetch = 0 : i64, scratch_operands = 0 : i64, tpu.core_type = #tpu.core_type<tc>, window_params = [{transform_indices = @transform_0, window_bounds = array<i64: 16, 128>}, {pipeline_mode = #tpu.pipeline_mode<synchronous>, transform_indices = @transform_1, window_bounds = array<i64: 1, 128>}, {pipeline_mode = #tpu.pipeline_mode<synchronous>, transform_indices = @transform_2, window_bounds = array<i64: 1, 128>}, {transform_indices = @transform_3, window_bounds = array<i64: 16, 128>}]} {
    %c0 = arith.constant 0 : index
    %c0_0 = arith.constant 0 : index
    %0 = vector.load %arg1[%c0, %c0_0] : memref<16x128xf32, #tpu.memory_space<vmem>>, vector<16x128xf32>
    %1 = tpu.iota {dimensions = array<i32: 1>} : vector<1x128xi32>
    %c32_i32 = arith.constant 32 : i32
    %2 = vector.broadcast %c32_i32 : i32 to vector<1x128xi32>
    %3 = arith.cmpi slt, %1, %2 : vector<1x128xi32>
    %cst = arith.constant dense<0.000000e+00> : vector<16xf32>
    %4 = vector.multi_reduction <add>, %0, %cst [1] : vector<16x128xf32> to vector<16xf32>
    %5 = vector.shape_cast %4 : vector<16xf32> to vector<16x1xf32>
    %cst_1 = arith.constant 3.200000e+01 : f32
    %6 = vector.broadcast %cst_1 : f32 to vector<16x1xf32>
    %7 = arith.divf %5, %6 : vector<16x1xf32>
    %8 = vector.broadcast %7 : vector<16x1xf32> to vector<16x128xf32>
    %9 = arith.subf %0, %8 : vector<16x128xf32>
    %cst_2 = arith.constant 0.000000e+00 : f32
    %10 = vector.shape_cast %3 : vector<1x128xi1> to vector<1x128xi1>
    %11 = vector.broadcast %10 : vector<1x128xi1> to vector<16x128xi1>
    %12 = vector.broadcast %cst_2 : f32 to vector<16x128xf32>
    %13 = arith.select %11, %9, %12 : vector<16x128xi1>, vector<16x128xf32>
    %14 = arith.mulf %13, %13 : vector<16x128xf32>
    %cst_3 = arith.constant dense<0.000000e+00> : vector<16xf32>
    %15 = vector.multi_reduction <add>, %14, %cst_3 [1] : vector<16x128xf32> to vector<16xf32>
    %16 = vector.shape_cast %15 : vector<16xf32> to vector<16x1xf32>
    %cst_4 = arith.constant 3.100000e+01 : f32
    %17 = vector.broadcast %cst_4 : f32 to vector<16x1xf32>
    %18 = arith.divf %16, %17 : vector<16x1xf32>
    %cst_5 = arith.constant 9.99999974E-6 : f32
    %19 = vector.broadcast %cst_5 : f32 to vector<16x1xf32>
    %20 = arith.addf %18, %19 : vector<16x1xf32>
    %21 = math.sqrt %20 : vector<16x1xf32>
    %cst_6 = arith.constant 9.99999997E-7 : f32
    %22 = vector.broadcast %cst_6 : f32 to vector<16x1xf32>
    %23 = arith.addf %21, %22 : vector<16x1xf32>
    %24 = tpu.reciprocal %23 {approx = true} : vector<16x1xf32> -> vector<16x1xf32>
    %25 = vector.broadcast %24 : vector<16x1xf32> to vector<16x128xf32>
    %26 = arith.mulf %9, %25 : vector<16x128xf32>
    %c0_7 = arith.constant 0 : index
    %c0_8 = arith.constant 0 : index
    %27 = vector.load %arg2[%c0_7, %c0_8] : memref<1x128xf32, #tpu.memory_space<vmem>>, vector<1x128xf32>
    %c0_9 = arith.constant 0 : index
    %c0_10 = arith.constant 0 : index
    %28 = vector.load %arg3[%c0_9, %c0_10] : memref<1x128xf32, #tpu.memory_space<vmem>>, vector<1x128xf32>
    %29 = vector.broadcast %27 : vector<1x128xf32> to vector<16x128xf32>
    %30 = arith.mulf %29, %26 : vector<16x128xf32>
    %31 = vector.broadcast %28 : vector<1x128xf32> to vector<16x128xf32>
    %32 = arith.addf %30, %31 : vector<16x128xf32>
    %c0_11 = arith.constant 0 : index
    %c0_12 = arith.constant 0 : index
    %33 = vector.load %arg4[%c0_11, %c0_12] : memref<16x128xf32, #tpu.memory_space<vmem>>, vector<16x128xf32>
    tpu.vector_store %arg4[%c0_11, %c0_12], %32 {strides = array<i32>} : memref<16x128xf32, #tpu.memory_space<vmem>>, vector<16x128xf32>,
    return
  }
  func.func @transform_0(%arg0: i32) -> (i32, i32) {
    %c0_i32 = arith.constant 0 : i32
    %c0_i32_0 = arith.constant 0 : i32
    return %arg0, %c0_i32 : i32, i32
  }
  func.func @transform_1(%arg0: i32) -> (i32, i32) {
    %c0_i32 = arith.constant 0 : i32
    %c0_i32_0 = arith.constant 0 : i32
    %c0_i32_1 = arith.constant 0 : i32
    return %c0_i32, %c0_i32_0 : i32, i32
  }
  func.func @transform_2(%arg0: i32) -> (i32, i32) {
    %c0_i32 = arith.constant 0 : i32
    %c0_i32_0 = arith.constant 0 : i32
    %c0_i32_1 = arith.constant 0 : i32
    return %c0_i32, %c0_i32_0 : i32, i32
  }
  func.func @transform_3(%arg0: i32) -> (i32, i32) {
    %c0_i32 = arith.constant 0 : i32
    %c0_i32_0 = arith.constant 0 : i32
    return %arg0, %c0_i32 : i32, i32
  }
}

</mosaic_0001>

<bundles_post_ra>
// kernel: tpu_custom_call.1
= control target key start
LH: loop header
LB: loop body
LE: loop exit
PB: predicated region body
PF: predicated region fallthrough
CT: control target
= control target key end

     0   :  { %8 = vsyncpa [#allocation3], 0  ;;  %s294_s0 = inlined_call_operand.hbm [shape: f32[16,128], index: 0, kind: input, shape index: {}]   ;;  %s295_s1 = inlined_call_operand.hbm [shape: f32[1,128], index: 1, kind: input, shape index: {}]   ;;  %s296_s2 = inlined_call_operand.vmem [shape: f32[1,128], index: 2, kind: input, shape index: {}]   ;;  %s297_s3 = inlined_call_operand.hbm [shape: f32[16,128], index: 3, kind: output, shape index: {}]  }
   0x1   :  { %9 = vsyncpa [#allocation6], 0 }
   0x2   :  { %10 = vsyncpa [#allocation4], 0  ;;  %s15_s14 = sshll.u32 %s294_s0, 4  ;;  %s249_s15 = smov [#allocation2]   ;;  %s16_s14 = int_to_ptr.hbm [resolvable:$true] %s15_s14 }
   0x3   :  { %s17_s16 = sshll.u32 %s249_s15, 4  ;;  %s29_s19 = sshll.u32 %s295_s1, 4  ;;  %s18_s16 = int_to_ptr.vmem [resolvable:$true] %s17_s16  ;;  %s30_s19 = int_to_ptr.hbm [resolvable:$true] %s29_s19 }
   0x4   :  { %s250_s20 = smov 128   ;;  %s251_s21 = smov 8  }
   0x5   :  { %23 = dma.hbm_to_vmem [thread:$0]  %s16_s14, 256, %s18_s16, [#allocation3], %s250_s20, %s250_s20, %s251_s21  }
   0x6   :  { %s252_s22 = smov [#allocation5]  }
   0x7   :  { %s31_s23 = sshll.u32 %s252_s22, 4  ;;  %s32_s23 = int_to_ptr.vmem [resolvable:$true] %s31_s23 }
   0x8   :  { %34 = dma.hbm_to_vmem [thread:$0]  %s30_s19, 16, %s32_s23, [#allocation6]  }
   0x9   :  { %243 = dma.done.wait [#allocation3], 256  }
   0xa   :  { %244 = vsyncadd [#allocation3], 4294967040 }
   0xb   :  { %245 = dma.done.wait [#allocation6], 16  }
   0xc   :  { %246 = vsyncadd [#allocation6], 4294967280  ;;  %v45_v0 = vld [vmem:[#allocation2] sm:$0xff]  ;;  %v46_v1 = vld [vmem:[#allocation2 + $0x8] sm:$0xff]  ;;  %v253_v2 = vmov 32.0   ;;  %v47_v8 = vlaneseq  ;;  %v254_v21 = vmov 31.0  }
   0xd   :  { %50 = vadd.xlane.f32.xlu0 %v45_v0  ;;  %159 = vrcp.f32 %v253_v2  ;;  %v157_v55 = vld [vmem:[#allocation5] ss:$0 sm:$0xff]  ;;  %v158_v59 = vld [vmem:[%s296_s2] ss:$0 sm:$0xff]  ;;  %s255_s24 = smov [#allocation7]   ;;  %s136_s28 = sshll.u32 %s297_s3, 4  ;;  %s137_s28 = int_to_ptr.hbm [resolvable:$true] %s136_s28 }
   0xe   :  { %v48_v10 = vand.u32 127, %v47_v8  ;;  %161 = vrcp.f32 %v254_v21  ;;  %s134_s25 = sshll.u32 %s255_s24, 4  ;;  %s135_s25 = int_to_ptr.vmem [resolvable:$true] %s134_s25 }
  0x10   :  { %vm49_vm1 = vcmp.lt.s32.totalorder %v48_v10, 32 }
  0x13   :  { %v160_v3 = vpop.eup %159 }
  0x14   :  { %v55_v4 = vmul.f32 32.0, %v160_v3  ;;  %vm59_vm0 = vweird.f32 %v160_v3  ;;  %v162_v22 = vpop.eup %161 }
  0x15   :  { %52 = vadd.xlane.f32.xlu0 %v46_v1  ;;  %v76_v23 = vmul.f32 31.0, %v162_v22  ;;  %vm80_vm2 = vweird.f32 %v162_v22 }
  0x16   :  { %v56_v5 = vsub.f32 1.0, %v55_v4 }
  0x17   :  { %v77_v24 = vsub.f32 1.0, %v76_v23 }
  0x18   :  { %v57_v6 = vmul.f32 %v160_v3, %v56_v5 }
  0x19   :  { %v78_v25 = vmul.f32 %v162_v22, %v77_v24 }
  0x1a   :  { %v58_v7 = vadd.f32 %v160_v3, %v57_v6 }
  0x1b   :  { %v79_v26 = vadd.f32 %v162_v22, %v78_v25 }
  0x1c   :  { %v60_v9 = vsel %vm59_vm0, %v160_v3, %v58_v7 }
  0x1d   :  { %v81_v27 = vsel %vm80_vm2, %v162_v22, %v79_v26 }
  0x80   :  { %v51_v11 = vpop.xlane.xlu0 %50 }
  0x81   :  { %v61_v12 = vmul.f32 %v60_v9, %v51_v11 }
  0x83   :  { %v63_v13 = vsub.f32 %v45_v0, %v61_v12 }
  0x85   :  { %v67_v14 = vsel %vm49_vm1, %v63_v13, 0.0 }
  0x86   :  { %v69_v15 = vmul.f32 %v67_v14, %v67_v14 }
  0x88   :  { %71 = vadd.xlane.f32.xlu1 %v69_v15  ;;  %v53_v16 = vpop.xlane.xlu0 %52 }
  0x89   :  { %v62_v17 = vmul.f32 %v60_v9, %v53_v16 }
  0x8b   :  { %v64_v18 = vsub.f32 %v46_v1, %v62_v17 }
  0x8d   :  { %v68_v19 = vsel %vm49_vm1, %v64_v18, 0.0 }
  0x8e   :  { %v70_v20 = vmul.f32 %v68_v19, %v68_v19 }
  0x90   :  { %73 = vadd.xlane.f32.xlu1 %v70_v20 }
  0xfb   :  { %v72_v28 = vpop.xlane.xlu1 %71 }
  0xfc   :  { %v82_v29 = vmul.f32 %v81_v27, %v72_v28 }
  0xfe   :  { %v84_v30 = vadd.f32 1e-05, %v82_v29 }
 0x100   :  { %163 = vrsqrt.f32 %v84_v30  ;;  %vm93_vm3 = vcmp.eq.f32.partialorder %v84_v30, inf  ;;  %v96_v44 = vand.u32 2147483648, %v84_v30  ;;  %vm95_vm4 = vcmp.eq.f32.partialorder %v84_v30, 0.0 }
 0x103   :  { %v74_v31 = vpop.xlane.xlu1 %73 }
 0x104   :  { %v83_v32 = vmul.f32 %v81_v27, %v74_v31 }
 0x106   :  { %v164_v33 = vpop.eup %163  ;;  %v85_v34 = vadd.f32 1e-05, %v83_v32 }
 0x107   :  { %v87_v35 = vmul.f32 %v164_v33, %v84_v30 }
 0x108   :  { %165 = vrsqrt.f32 %v85_v34  ;;  %vm105_vm5 = vcmp.eq.f32.partialorder %v85_v34, inf  ;;  %v108_v52 = vand.u32 2147483648, %v85_v34  ;;  %vm107_vm6 = vcmp.eq.f32.partialorder %v85_v34, 0.0 }
 0x109   :  { %v88_v36 = vmul.f32 %v164_v33, %v87_v35 }
 0x10b   :  { %v89_v37 = vmul.f32 0.5, %v88_v36 }
 0x10d   :  { %v90_v38 = vsub.f32 1.5, %v89_v37 }
 0x10e   :  { %v166_v39 = vpop.eup %165 }
 0x10f   :  { %v91_v40 = vmul.f32 %v164_v33, %v90_v38  ;;  %v99_v41 = vmul.f32 %v166_v39, %v85_v34 }
 0x111   :  { %v92_v42 = vmul.f32 %v91_v40, %v84_v30  ;;  %v100_v43 = vmul.f32 %v166_v39, %v99_v41 }
 0x113   :  { %v101_v45 = vmul.f32 0.5, %v100_v43  ;;  %v94_v46 = vsel %vm93_vm3, %v84_v30, %v92_v42 }
 0x114   :  { %v97_v47 = vsel %vm95_vm4, %v96_v44, %v94_v46 }
 0x115   :  { %v102_v48 = vsub.f32 1.5, %v101_v45  ;;  %v110_v49 = vadd.f32 1e-06, %v97_v47 }
 0x117   :  { %v103_v50 = vmul.f32 %v166_v39, %v102_v48  ;;  %167 = vrcp.f32 %v110_v49 }
 0x119   :  { %v104_v51 = vmul.f32 %v103_v50, %v85_v34 }
 0x11b   :  { %v106_v53 = vsel %vm105_vm5, %v85_v34, %v104_v51 }
 0x11c   :  { %v109_v54 = vsel %vm107_vm6, %v108_v52, %v106_v53 }
 0x11d   :  { %v168_v56 = vpop.eup %167  ;;  %v111_v57 = vadd.f32 1e-06, %v109_v54 }
 0x11e   :  { %v114_v58 = vmul.f32 %v168_v56, %v63_v13 }
 0x11f   :  { %169 = vrcp.f32 %v111_v57 }
 0x120   :  { %v121_v60 = vmul.f32 %v157_v55, %v114_v58 }
 0x122   :  { %v126_v61 = vadd.f32 %v158_v59, %v121_v60 }
 0x124   :  { %128 = vst [vmem:[#allocation7] sm:$0xff] %v126_v61 }
 0x125   :  { %v170_v62 = vpop.eup %169 }
 0x126   :  { %v115_v63 = vmul.f32 %v170_v62, %v64_v18 }
 0x128   :  { %v122_v0 = vmul.f32 %v157_v55, %v115_v63 }
 0x12a   :  { %v127_v1 = vadd.f32 %v158_v59, %v122_v0 }
 0x12c   :  { %129 = vst [vmem:[#allocation7 + $0x8] sm:$0xff] %v127_v1 }
 0x12d   :  { %142 = dma.vmem_to_hbm [thread:$0]  %s135_s25, 256, %s137_s28, [#allocation4], %s250_s20, %s250_s20, %s251_s21  }
 0x12e   :  { %247 = dma.done.wait [#allocation4], 256  }
 0x12f   :  { %248 = vsyncadd [#allocation4], 4294967040 }
 0x130   :  { %147 = vsyncpa [#allocation3], 1 }
 0x131   :  { %148 = vsyncpa [#allocation6], 1 }
 0x132   :  { %149 = vsyncpa [#allocation4], 1 }

</bundles_post_ra>
